<compile_context>
chip_gen: v5e
topology: v5e:2x2
jax: 0.10.0
libtpu: 0.0.40
codegen_flags: <defaults>
</compile_context>

<pallas_src>
import jax
import jax.numpy as jnp
from jax.experimental import pallas as pl
from jax.experimental.pallas import tpu as pltpu


def _add_kernel(a_ref, b_ref, o_ref):
    # Whole-tile elementwise add on the VPU; single unmasked-dominant vst stream.
    o_ref[...] = a_ref[...] + b_ref[...]


def _lane_dense_2d(total: int):
    """Pick a 2-D shape (rows, cols) with rows | total, preferring 8 full sublanes
    so the lane (last) dim is as long/dense as possible."""
    for rows in (8, 4, 2, 1):
        if total % rows == 0:
            return (rows, total // rows)
    return (1, total)


@jax.jit
def pallas_add(x367: jax.Array, x352: jax.Array) -> jax.Array:
    assert x367.shape == x352.shape and x367.dtype == x352.dtype
    orig_shape = x367.shape

    total = 1
    for d in orig_shape:
        total *= d
    shape2 = _lane_dense_2d(total)  # (8, 4312) for [1, 176, 14, 14]

    a2 = x367.reshape(shape2)
    b2 = x352.reshape(shape2)

    vmem_spec = pl.BlockSpec(memory_space=pltpu.MemorySpace.VMEM)

    elem_bytes = jnp.dtype(x367.dtype).itemsize

    out2 = pl.pallas_call(
        _add_kernel,
        out_shape=jax.ShapeDtypeStruct(shape2, a2.dtype),
        # No grid: single invocation on the whole (small) array, no pipeline
        # prologue, no double-buffered windows, no index_map plumbing.
        in_specs=[vmem_spec, vmem_spec],
        out_specs=vmem_spec,
        # Advisory cost hint so XLA can schedule around the custom call.
        cost_estimate=pl.CostEstimate(
            flops=total,
            bytes_accessed=3 * total * elem_bytes,
            transcendentals=0,
        ),
    )(a2, b2)

    return out2.reshape(orig_shape)


if __name__ == "__main__":
    key = jax.random.PRNGKey(0)
    k1, k2 = jax.random.split(key)

    # Shapes implied by the module's forward: [1, 176, 14, 14]
    x367 = jax.random.normal(k1, (1, 176, 14, 14), dtype=jnp.float32)
    x352 = jax.random.normal(k2, (1, 176, 14, 14), dtype=jnp.float32)

    out = pallas_add(x367, x352)
    jax.block_until_ready(out)

    # Cross-check against plain JAX reference.
    ref = x367 + x352
    assert out.shape == ref.shape and out.dtype == ref.dtype
    assert jnp.allclose(out, ref, atol=1e-6, rtol=1e-6)

    print("KERNEL_OK")
</pallas_src>

<mosaic_0001>
module attributes {stable_mosaic.version = 11 : i64} {
  func.func @_add_kernel(%arg0: memref<8x4312xf32, #tpu.memory_space<vmem>>, %arg1: memref<8x4312xf32, #tpu.memory_space<vmem>>, %arg2: memref<8x4312xf32, #tpu.memory_space<vmem>>) attributes {dimension_semantics = [], scalar_prefetch = 0 : i64, scratch_operands = 0 : i64, tpu.core_type = #tpu.core_type<tc>} {
    %c0 = arith.constant 0 : index
    %c0_0 = arith.constant 0 : index
    %0 = vector.load %arg0[%c0, %c0_0] : memref<8x4312xf32, #tpu.memory_space<vmem>>, vector<8x4312xf32>
    %c0_1 = arith.constant 0 : index
    %c0_2 = arith.constant 0 : index
    %1 = vector.load %arg1[%c0_1, %c0_2] : memref<8x4312xf32, #tpu.memory_space<vmem>>, vector<8x4312xf32>
    %2 = arith.addf %0, %1 : vector<8x4312xf32>
    %c0_3 = arith.constant 0 : index
    %c0_4 = arith.constant 0 : index
    %3 = vector.load %arg2[%c0_3, %c0_4] : memref<8x4312xf32, #tpu.memory_space<vmem>>, vector<8x4312xf32>
    tpu.vector_store %arg2[%c0_3, %c0_4], %2 {strides = array<i32>} : memref<8x4312xf32, #tpu.memory_space<vmem>>, vector<8x4312xf32>,
    return
  }
}

</mosaic_0001>

<bundles_post_ra>
// kernel: pallas_add.1
= control target key start
LH: loop header
LB: loop body
LE: loop exit
PB: predicated region body
PF: predicated region fallthrough
CT: control target
= control target key end

     0   :  { %vm146_vm0 = vcmask 719872   ;;  %s473_s0 = inlined_call_operand.vmem [shape: f32[8,4312], index: 0, kind: input, shape index: {}]   ;;  %s474_s1 = inlined_call_operand.vmem [shape: f32[8,4312], index: 1, kind: input, shape index: {}]   ;;  %s475_s2 = inlined_call_operand.vmem [shape: f32[8,4312], index: 2, kind: output, shape index: {}]  }
   0x1   :  { %v11_v0 = vld [vmem:[%s473_s0] sm:$0xff]  ;;  %v12_v2 = vld [vmem:[%s473_s0 + $0x8] sm:$0xff]  ;;  %v13_v5 = vld [vmem:[%s473_s0 + $0x10] sm:$0xff] }
   0x2   :  { %v45_v1 = vld [vmem:[%s474_s1] sm:$0xff]  ;;  %v46_v4 = vld [vmem:[%s474_s1 + $0x8] sm:$0xff]  ;;  %v47_v6 = vld [vmem:[%s474_s1 + $0x10] sm:$0xff] }
   0x3   :  { %v79_v3 = vadd.f32 %v45_v1, %v11_v0  ;;  %v80_v7 = vadd.f32 %v46_v4, %v12_v2  ;;  %v81_v8 = vadd.f32 %v47_v6, %v13_v5  ;;  %v14_v9 = vld [vmem:[%s473_s0 + $0x18] sm:$0xff]  ;;  %v15_v11 = vld [vmem:[%s473_s0 + $0x20] sm:$0xff]  ;;  %v16_v14 = vld [vmem:[%s473_s0 + $0x28] sm:$0xff] }
   0x4   :  { %v48_v10 = vld [vmem:[%s474_s1 + $0x18] sm:$0xff]  ;;  %v49_v13 = vld [vmem:[%s474_s1 + $0x20] sm:$0xff]  ;;  %v50_v15 = vld [vmem:[%s474_s1 + $0x28] sm:$0xff] }
   0x5   :  { %113 = vst [vmem:[%s475_s2] sm:$0xff] %v79_v3  ;;  %v82_v12 = vadd.f32 %v48_v10, %v14_v9  ;;  %v83_v16 = vadd.f32 %v49_v13, %v15_v11  ;;  %v84_v17 = vadd.f32 %v50_v15, %v16_v14  ;;  %v17_v18 = vld [vmem:[%s473_s0 + $0x30] sm:$0xff]  ;;  %v18_v20 = vld [vmem:[%s473_s0 + $0x38] sm:$0xff]  ;;  %v19_v23 = vld [vmem:[%s473_s0 + $0x40] sm:$0xff] }
   0x6   :  { %114 = vst [vmem:[%s475_s2 + $0x8] sm:$0xff] %v80_v7  ;;  %v51_v19 = vld [vmem:[%s474_s1 + $0x30] sm:$0xff]  ;;  %v52_v22 = vld [vmem:[%s474_s1 + $0x38] sm:$0xff]  ;;  %v53_v24 = vld [vmem:[%s474_s1 + $0x40] sm:$0xff] }
   0x7   :  { %115 = vst [vmem:[%s475_s2 + $0x10] sm:$0xff] %v81_v8  ;;  %v85_v21 = vadd.f32 %v51_v19, %v17_v18  ;;  %v86_v25 = vadd.f32 %v52_v22, %v18_v20  ;;  %v20_v26 = vld [vmem:[%s473_s0 + $0x48] sm:$0xff]  ;;  %v21_v28 = vld [vmem:[%s473_s0 + $0x50] sm:$0xff]  ;;  %v87_v29 = vadd.f32 %v53_v24, %v19_v23  ;;  %v22_v31 = vld [vmem:[%s473_s0 + $0x58] sm:$0xff] }
   0x8   :  { %116 = vst [vmem:[%s475_s2 + $0x18] sm:$0xff] %v82_v12  ;;  %v54_v27 = vld [vmem:[%s474_s1 + $0x48] sm:$0xff]  ;;  %v55_v30 = vld [vmem:[%s474_s1 + $0x50] sm:$0xff]  ;;  %v56_v32 = vld [vmem:[%s474_s1 + $0x58] sm:$0xff] }
   0x9   :  { %117 = vst [vmem:[%s475_s2 + $0x20] sm:$0xff] %v83_v16  ;;  %v88_v33 = vadd.f32 %v54_v27, %v20_v26  ;;  %v23_v34 = vld [vmem:[%s473_s0 + $0x60] sm:$0xff]  ;;  %v89_v36 = vadd.f32 %v55_v30, %v21_v28  ;;  %v24_v37 = vld [vmem:[%s473_s0 + $0x68] sm:$0xff]  ;;  %v90_v39 = vadd.f32 %v56_v32, %v22_v31  ;;  %v25_v40 = vld [vmem:[%s473_s0 + $0x70] sm:$0xff] }
   0xa   :  { %118 = vst [vmem:[%s475_s2 + $0x28] sm:$0xff] %v84_v17  ;;  %v57_v35 = vld [vmem:[%s474_s1 + $0x60] sm:$0xff]  ;;  %v58_v38 = vld [vmem:[%s474_s1 + $0x68] sm:$0xff]  ;;  %v59_v41 = vld [vmem:[%s474_s1 + $0x70] sm:$0xff] }
   0xb   :  { %119 = vst [vmem:[%s475_s2 + $0x30] sm:$0xff] %v85_v21  ;;  %v91_v42 = vadd.f32 %v57_v35, %v23_v34  ;;  %v26_v43 = vld [vmem:[%s473_s0 + $0x78] sm:$0xff]  ;;  %v92_v45 = vadd.f32 %v58_v38, %v24_v37  ;;  %v27_v46 = vld [vmem:[%s473_s0 + $0x80] sm:$0xff]  ;;  %v93_v48 = vadd.f32 %v59_v41, %v25_v40  ;;  %v28_v49 = vld [vmem:[%s473_s0 + $0x88] sm:$0xff] }
   0xc   :  { %120 = vst [vmem:[%s475_s2 + $0x38] sm:$0xff] %v86_v25  ;;  %v60_v44 = vld [vmem:[%s474_s1 + $0x78] sm:$0xff]  ;;  %v61_v47 = vld [vmem:[%s474_s1 + $0x80] sm:$0xff]  ;;  %v62_v50 = vld [vmem:[%s474_s1 + $0x88] sm:$0xff] }
   0xd   :  { %121 = vst [vmem:[%s475_s2 + $0x40] sm:$0xff] %v87_v29  ;;  %v94_v51 = vadd.f32 %v60_v44, %v26_v43  ;;  %v29_v52 = vld [vmem:[%s473_s0 + $0x90] sm:$0xff]  ;;  %v95_v54 = vadd.f32 %v61_v47, %v27_v46  ;;  %v30_v55 = vld [vmem:[%s473_s0 + $0x98] sm:$0xff]  ;;  %v96_v57 = vadd.f32 %v62_v50, %v28_v49  ;;  %v31_v58 = vld [vmem:[%s473_s0 + $0xa0] sm:$0xff] }
   0xe   :  { %122 = vst [vmem:[%s475_s2 + $0x48] sm:$0xff] %v88_v33  ;;  %v63_v53 = vld [vmem:[%s474_s1 + $0x90] sm:$0xff]  ;;  %v64_v56 = vld [vmem:[%s474_s1 + $0x98] sm:$0xff]  ;;  %v65_v59 = vld [vmem:[%s474_s1 + $0xa0] sm:$0xff] }
   0xf   :  { %123 = vst [vmem:[%s475_s2 + $0x50] sm:$0xff] %v89_v36  ;;  %v97_v60 = vadd.f32 %v63_v53, %v29_v52  ;;  %v32_v61 = vld [vmem:[%s473_s0 + $0xa8] sm:$0xff]  ;;  %v98_v63 = vadd.f32 %v64_v56, %v30_v55  ;;  %v33_v0 = vld [vmem:[%s473_s0 + $0xb0] sm:$0xff]  ;;  %v99_v2 = vadd.f32 %v65_v59, %v31_v58  ;;  %v34_v3 = vld [vmem:[%s473_s0 + $0xb8] sm:$0xff] }
  0x10   :  { %124 = vst [vmem:[%s475_s2 + $0x58] sm:$0xff] %v90_v39  ;;  %v66_v62 = vld [vmem:[%s474_s1 + $0xa8] sm:$0xff]  ;;  %v67_v1 = vld [vmem:[%s474_s1 + $0xb0] sm:$0xff]  ;;  %v68_v4 = vld [vmem:[%s474_s1 + $0xb8] sm:$0xff] }
  0x11   :  { %125 = vst [vmem:[%s475_s2 + $0x60] sm:$0xff] %v91_v42  ;;  %v100_v5 = vadd.f32 %v66_v62, %v32_v61  ;;  %v35_v6 = vld [vmem:[%s473_s0 + $0xc0] sm:$0xff]  ;;  %v101_v8 = vadd.f32 %v67_v1, %v33_v0  ;;  %v36_v9 = vld [vmem:[%s473_s0 + $0xc8] sm:$0xff]  ;;  %v102_v11 = vadd.f32 %v68_v4, %v34_v3  ;;  %v37_v12 = vld [vmem:[%s473_s0 + $0xd0] sm:$0xff] }
  0x12   :  { %126 = vst [vmem:[%s475_s2 + $0x68] sm:$0xff] %v92_v45  ;;  %v69_v7 = vld [vmem:[%s474_s1 + $0xc0] sm:$0xff]  ;;  %v70_v10 = vld [vmem:[%s474_s1 + $0xc8] sm:$0xff]  ;;  %v71_v13 = vld [vmem:[%s474_s1 + $0xd0] sm:$0xff] }
  0x13   :  { %127 = vst [vmem:[%s475_s2 + $0x70] sm:$0xff] %v93_v48  ;;  %v103_v14 = vadd.f32 %v69_v7, %v35_v6  ;;  %v38_v15 = vld [vmem:[%s473_s0 + $0xd8] sm:$0xff]  ;;  %v104_v17 = vadd.f32 %v70_v10, %v36_v9  ;;  %v39_v18 = vld [vmem:[%s473_s0 + $0xe0] sm:$0xff]  ;;  %v105_v20 = vadd.f32 %v71_v13, %v37_v12  ;;  %v40_v21 = vld [vmem:[%s473_s0 + $0xe8] sm:$0xff] }
  0x14   :  { %128 = vst [vmem:[%s475_s2 + $0x78] sm:$0xff] %v94_v51  ;;  %v72_v16 = vld [vmem:[%s474_s1 + $0xd8] sm:$0xff]  ;;  %v73_v19 = vld [vmem:[%s474_s1 + $0xe0] sm:$0xff]  ;;  %v74_v22 = vld [vmem:[%s474_s1 + $0xe8] sm:$0xff] }
  0x15   :  { %129 = vst [vmem:[%s475_s2 + $0x80] sm:$0xff] %v95_v54  ;;  %v106_v23 = vadd.f32 %v72_v16, %v38_v15  ;;  %v41_v24 = vld [vmem:[%s473_s0 + $0xf0] sm:$0xff]  ;;  %v107_v26 = vadd.f32 %v73_v19, %v39_v18  ;;  %v42_v27 = vld [vmem:[%s473_s0 + $0xf8] sm:$0xff]  ;;  %v108_v29 = vadd.f32 %v74_v22, %v40_v21  ;;  %v43_v30 = vld [vmem:[%s473_s0 + $0x100] sm:$0xff] }
  0x16   :  { %130 = vst [vmem:[%s475_s2 + $0x88] sm:$0xff] %v96_v57  ;;  %v75_v25 = vld [vmem:[%s474_s1 + $0xf0] sm:$0xff]  ;;  %v76_v28 = vld [vmem:[%s474_s1 + $0xf8] sm:$0xff]  ;;  %v77_v31 = vld [vmem:[%s474_s1 + $0x100] sm:$0xff] }
  0x17   :  { %131 = vst [vmem:[%s475_s2 + $0x90] sm:$0xff] %v97_v60  ;;  %v109_v32 = vadd.f32 %v75_v25, %v41_v24  ;;  %v44_v33 = vld [vmem:[%s473_s0 + $0x108] sm:$0xff]  ;;  %v110_v35 = vadd.f32 %v76_v28, %v42_v27  ;;  %v111_v36 = vadd.f32 %v77_v31, %v43_v30 }
  0x18   :  { %132 = vst [vmem:[%s475_s2 + $0x98] sm:$0xff] %v98_v63  ;;  %v78_v34 = vld [vmem:[%s474_s1 + $0x108] sm:$0xff] }
  0x19   :  { %133 = vst [vmem:[%s475_s2 + $0xa0] sm:$0xff] %v99_v2  ;;  %v112_v37 = vadd.f32 %v78_v34, %v44_v33 }
  0x1a   :  { %134 = vst [vmem:[%s475_s2 + $0xa8] sm:$0xff] %v100_v5 }
  0x1b   :  { %135 = vst [vmem:[%s475_s2 + $0xb0] sm:$0xff] %v101_v8 }
  0x1c   :  { %136 = vst [vmem:[%s475_s2 + $0xb8] sm:$0xff] %v102_v11 }
  0x1d   :  { %137 = vst [vmem:[%s475_s2 + $0xc0] sm:$0xff] %v103_v14 }
  0x1e   :  { %138 = vst [vmem:[%s475_s2 + $0xc8] sm:$0xff] %v104_v17 }
  0x1f   :  { %139 = vst [vmem:[%s475_s2 + $0xd0] sm:$0xff] %v105_v20 }
  0x20   :  { %140 = vst [vmem:[%s475_s2 + $0xd8] sm:$0xff] %v106_v23 }
  0x21   :  { %141 = vst [vmem:[%s475_s2 + $0xe0] sm:$0xff] %v107_v26 }
  0x22   :  { %142 = vst [vmem:[%s475_s2 + $0xe8] sm:$0xff] %v108_v29 }
  0x23   :  { %143 = vst [vmem:[%s475_s2 + $0xf0] sm:$0xff] %v109_v32 }
  0x24   :  { %144 = vst [vmem:[%s475_s2 + $0xf8] sm:$0xff] %v110_v35 }
  0x25   :  { %145 = vst [vmem:[%s475_s2 + $0x100] sm:$0xff] %v111_v36 }
  0x26   :  { %147 = vst.msk [vmem:[%s475_s2 + $0x108] sm:$0xff] %vm146_vm0, %v112_v37 }

</bundles_post_ra>
